<compile_context>
chip_gen: v7x
topology: tpu7x:2x2x1
jax: 0.10.0
libtpu: 0.0.40
codegen_flags: <defaults>
</compile_context>

<pallas_src>
import math

import jax
import jax.numpy as jnp
from jax.experimental import pallas as pl
from jax.experimental.pallas import tpu as pltpu

# ---- small shapes consistent with the module ----
BATCH = 2
SEQ = 8
D_MODEL = 32
MAX_LEN = 1000

LANES = 128        # vreg lane width
BLOCK_ROWS = 512   # 512x128 f32 = 256 KiB/block (~85% HBM roofline tile on v6e)


def pe_add_kernel(x_ref, pe_ref, o_ref):
    # Pure VPU elementwise add on a lane/sublane-dense (rows, 128) tile.
    # Accumulate in f32 (v5e VPU/EUP have no native bf16); cast back on store.
    o_ref[...] = (
        x_ref[...].astype(jnp.float32) + pe_ref[...].astype(jnp.float32)
    ).astype(o_ref.dtype)


def make_pe_table(d_model: int, max_len: int = MAX_LEN) -> jnp.ndarray:
    """Host-side equivalent of the module's `pe` buffer, shape (max_len, d_model)."""
    position = jnp.arange(max_len, dtype=jnp.float32)[:, None]
    div_term = jnp.exp(
        jnp.arange(0, d_model, 2, dtype=jnp.float32) * (-math.log(10000.0) / d_model)
    )
    angles = position * div_term  # (max_len, d_model // 2)
    pe = jnp.zeros((max_len, d_model), jnp.float32)
    pe = pe.at[:, 0::2].set(jnp.sin(angles))
    pe = pe.at[:, 1::2].set(jnp.cos(angles))
    return pe


@jax.jit
def positional_encoding(x: jnp.ndarray, pe_table: jnp.ndarray) -> jnp.ndarray:
    """Eval forward of PositionalEncoding: y = x + pe[:S], broadcast over batch.

    x: (B, S, D) -> (B, S, D)
    """
    B, S, D = x.shape
    total = B * S * D
    # Lane-dense + sublane-dense presentation: every 128 consecutive elements
    # form one vreg row. (Holds for the module's shapes: 2*8*32 = 512 = 4*128.)
    assert total % LANES == 0, "B*S*D must be a multiple of 128 for the lane-dense path"
    rows = total // LANES

    x_flat = x.reshape(rows, LANES)
    # pe broadcast over batch outside the kernel (S*D = 1 KiB here) and reshaped
    # to the same (rows, 128) slab so both inputs stream with identical specs.
    pe_flat = (
        jnp.broadcast_to(pe_table[:S][None, :, :], (B, S, D))
        .reshape(rows, LANES)
        .astype(x.dtype)
    )

    block_rows = min(rows, BLOCK_ROWS)  # block == full array for tiny shapes
    grid = (pl.cdiv(rows, block_rows),)

    out_flat = pl.pallas_call(
        pe_add_kernel,
        grid=grid,
        in_specs=[
            pl.BlockSpec((block_rows, LANES), lambda i: (i, 0)),  # x rows (streamed)
            pl.BlockSpec((block_rows, LANES), lambda i: (i, 0)),  # pe rows (streamed)
        ],
        out_specs=pl.BlockSpec((block_rows, LANES), lambda i: (i, 0)),
        out_shape=jax.ShapeDtypeStruct((rows, LANES), x.dtype),
        input_output_aliases={0: 0},  # y overwrites the x slab (pure residual add)
        compiler_params=pltpu.CompilerParams(
            # rows are fully independent -> shard across v7x's 2 TensorCores
            dimension_semantics=("parallel",),
        ),
    )(x_flat, pe_flat)

    return out_flat.reshape(B, S, D)


if __name__ == "__main__":
    key = jax.random.PRNGKey(0)
    x = jax.random.normal(key, (BATCH, SEQ, D_MODEL), jnp.float32)

    # `pe` register_buffer equivalent, built once at "init" time. The
    # phase_modulation (zeros) / coherence_scale (ones) parameters are unused
    # in the phase=None forward path.
    pe_table = make_pe_table(D_MODEL, MAX_LEN)

    y = positional_encoding(x, pe_table)
    jax.block_until_ready(y)

    assert y.shape == (BATCH, SEQ, D_MODEL)
    # sanity check against the pure-JAX reference of the module's eval forward
    ref = x + pe_table[:SEQ][None, :, :]
    assert jnp.allclose(y, ref, atol=1e-6)
    print("KERNEL_OK")
</pallas_src>

<mosaic_0001>
module attributes {stable_mosaic.version = 11 : i64} {
  func.func @pe_add_kernel(%arg0: i32, %arg1: memref<4x128xf32, #tpu.memory_space<vmem>>, %arg2: memref<4x128xf32, #tpu.memory_space<vmem>>, %arg3: memref<4x128xf32, #tpu.memory_space<vmem>>) attributes {dimension_semantics = [#tpu.dimension_semantics<parallel>], iteration_bounds = array<i64: 1>, scalar_prefetch = 0 : i64, scratch_operands = 0 : i64, tpu.core_type = #tpu.core_type<tc>, window_params = [{transform_indices = @transform_0, window_bounds = array<i64: 4, 128>}, {transform_indices = @transform_1, window_bounds = array<i64: 4, 128>}, {transform_indices = @transform_2, window_bounds = array<i64: 4, 128>}]} {
    %c0 = arith.constant 0 : index
    %c0_0 = arith.constant 0 : index
    %0 = vector.load %arg1[%c0, %c0_0] : memref<4x128xf32, #tpu.memory_space<vmem>>, vector<4x128xf32>
    %c0_1 = arith.constant 0 : index
    %c0_2 = arith.constant 0 : index
    %1 = vector.load %arg2[%c0_1, %c0_2] : memref<4x128xf32, #tpu.memory_space<vmem>>, vector<4x128xf32>
    %2 = arith.addf %0, %1 : vector<4x128xf32>
    %c0_3 = arith.constant 0 : index
    %c0_4 = arith.constant 0 : index
    %3 = vector.load %arg3[%c0_3, %c0_4] : memref<4x128xf32, #tpu.memory_space<vmem>>, vector<4x128xf32>
    tpu.vector_store %arg3[%c0_3, %c0_4], %2 {strides = array<i32>} : memref<4x128xf32, #tpu.memory_space<vmem>>, vector<4x128xf32>,
    return
  }
  func.func @transform_0(%arg0: i32) -> (i32, i32) {
    %c0_i32 = arith.constant 0 : i32
    %c0_i32_0 = arith.constant 0 : i32
    return %arg0, %c0_i32 : i32, i32
  }
  func.func @transform_1(%arg0: i32) -> (i32, i32) {
    %c0_i32 = arith.constant 0 : i32
    %c0_i32_0 = arith.constant 0 : i32
    return %arg0, %c0_i32 : i32, i32
  }
  func.func @transform_2(%arg0: i32) -> (i32, i32) {
    %c0_i32 = arith.constant 0 : i32
    %c0_i32_0 = arith.constant 0 : i32
    return %arg0, %c0_i32 : i32, i32
  }
}

</mosaic_0001>

<bundles_post_ra>
// kernel: positional_encoding.1
= control target key start
LH: loop header
LB: loop body
LE: loop exit
PB: predicated region body
PF: predicated region fallthrough
CT: control target
= control target key end

     0   :  { %s43_s0 = inlined_call_operand.vmem [shape: f32[4,128], index: 0, kind: input, shape index: {}, may-alias: {0,2}]   ;;  %s44_s1 = inlined_call_operand.vmem [shape: f32[4,128], index: 1, kind: input, shape index: {}]   ;;  %s45_s2 = inlined_call_operand.vmem [shape: f32[4,128], index: 2, kind: output, shape index: {}, may-alias: {0,2}]  }
   0x1   :  { %v11_v0 = vld [vmem:[%s43_s0] sm:$0xf] }
   0x2   :  { %v12_v1 = vld [vmem:[%s44_s1] sm:$0xf] }
   0x3   :  { %v13_v2 = vadd.f32 %v12_v1, %v11_v0 }
   0x5   :  { %14 = vst [vmem:[%s45_s2] sm:$0xf] %v13_v2 }

</bundles_post_ra>
